<compile_context>
chip_gen: v5e
topology: v5e:2x2
jax: 0.10.0
libtpu: 0.0.40
codegen_flags: <defaults>
</compile_context>

<pallas_src>
import jax
import jax.numpy as jnp
from jax.experimental import pallas as pl
from jax.experimental.pallas import tpu as pltpu

_LANE = 128     # lane width (last-dim tile)
_SUBLANE = 8    # sublane count (second-to-last-dim tile, f32)


def _round_up(x, m):
    return (x + m - 1) // m * m


# --------------------------------------------------------------------------
# Kernels
# --------------------------------------------------------------------------
def _encoder_cell_kernel(x_ref, hid_ref, ctx_ref, wx_ref, wh_ref, b_ref,
                         hid_out_ref, ctx_out_ref):
    """One LSTM-cell step.  All refs are whole-array VMEM blocks."""
    Hp = hid_out_ref.shape[-1]
    mxu_dt = wh_ref.dtype  # bfloat16 MXU operands, f32 accumulation

    gates = (
        jnp.dot(hid_ref[...].astype(mxu_dt), wh_ref[...],
                preferred_element_type=jnp.float32)
        + jnp.dot(x_ref[...].astype(mxu_dt), wx_ref[...],
                  preferred_element_type=jnp.float32)
        + b_ref[...]
    )

    # Lane-aligned static slices (Hp is a multiple of 128).
    f_t = jax.nn.sigmoid(gates[:, 0 * Hp:1 * Hp])
    i_t = jax.nn.sigmoid(gates[:, 1 * Hp:2 * Hp])
    c_t = jnp.tanh(gates[:, 2 * Hp:3 * Hp])
    o_t = jax.nn.sigmoid(gates[:, 3 * Hp:4 * Hp])

    ctx_new = f_t * ctx_ref[...] + i_t * c_t
    hid_new = o_t * jnp.tanh(ctx_new)

    hid_out_ref[...] = hid_new.astype(hid_out_ref.dtype)
    ctx_out_ref[...] = ctx_new.astype(ctx_out_ref.dtype)


def _input_proj_kernel(x_ref, wx_ref, b_ref, out_ref):
    """Time-parallel phase: xproj = x @ Wx + b for a tile of (T*B) rows."""
    out_ref[...] = (
        jnp.dot(x_ref[...], wx_ref[...], preferred_element_type=jnp.float32)
        + b_ref[...]
    )


def _encoder_recurrent_kernel(xproj_ref, h0_ref, c0_ref, wh_ref,
                              hid_seq_ref, ctx_seq_ref, hid_sc, ctx_sc):
    """Serial phase: grid=(T,), Wh resident, state carried in VMEM scratch."""
    t = pl.program_id(0)

    @pl.when(t == 0)
    def _():
        hid_sc[...] = h0_ref[...]
        ctx_sc[...] = c0_ref[...]

    Hp = hid_sc.shape[-1]
    mxu_dt = wh_ref.dtype

    gates = (
        jnp.dot(hid_sc[...].astype(mxu_dt), wh_ref[...],
                preferred_element_type=jnp.float32)
        + xproj_ref[0]                 # x @ Wx + b precomputed in phase 1
    )

    f_t = jax.nn.sigmoid(gates[:, 0 * Hp:1 * Hp])
    i_t = jax.nn.sigmoid(gates[:, 1 * Hp:2 * Hp])
    c_t = jnp.tanh(gates[:, 2 * Hp:3 * Hp])
    o_t = jax.nn.sigmoid(gates[:, 3 * Hp:4 * Hp])

    ctx_new = f_t * ctx_sc[...] + i_t * c_t
    hid_new = o_t * jnp.tanh(ctx_new)

    hid_sc[...] = hid_new
    ctx_sc[...] = ctx_new
    hid_seq_ref[0] = hid_new.astype(hid_seq_ref.dtype)
    ctx_seq_ref[0] = ctx_new.astype(ctx_seq_ref.dtype)


# --------------------------------------------------------------------------
# Wrappers
# --------------------------------------------------------------------------
def encoder_forward(x, params, hidden=None, ctx=None):
    """Single-step Encoder.forward.  x: [B, n_in] -> (hidden [B,H], ctx [B,H])."""
    n_in, n_hid = params["n_in"], params["n_hid"]
    B = x.shape[0]
    Hp = params["wh"].shape[0]
    Ip = params["wx"].shape[0]
    Bp = _round_up(B, _SUBLANE)

    if hidden is None:
        hidden = jnp.zeros((B, n_hid), x.dtype)
    if ctx is None:
        ctx = jnp.zeros((B, n_hid), x.dtype)

    x_p = jnp.zeros((Bp, Ip), jnp.float32).at[:B, :n_in].set(x.astype(jnp.float32))
    h_p = jnp.zeros((Bp, Hp), jnp.float32).at[:B, :n_hid].set(hidden.astype(jnp.float32))
    c_p = jnp.zeros((Bp, Hp), jnp.float32).at[:B, :n_hid].set(ctx.astype(jnp.float32))

    vmem = pl.BlockSpec(memory_space=pltpu.MemorySpace.VMEM)

    hid_new, ctx_new = pl.pallas_call(
        _encoder_cell_kernel,
        out_shape=(jax.ShapeDtypeStruct((Bp, Hp), jnp.float32),
                   jax.ShapeDtypeStruct((Bp, Hp), jnp.float32)),
        in_specs=[vmem] * 6,
        out_specs=(vmem, vmem),
        # Alias incoming state buffers with the outgoing state.
        input_output_aliases={1: 0, 2: 1},
    )(x_p, h_p, c_p, params["wx"], params["wh"], params["b"])

    return (hid_new[:B, :n_hid].astype(x.dtype),
            ctx_new[:B, :n_hid].astype(x.dtype))


def encoder_forward_sequence(xs, params, hidden=None, ctx=None):
    """Run the Encoder cell over a full sequence.

    xs: [T, B, n_in]; returns (hid_seq [T,B,H], ctx_seq [T,B,H]).
    Phase 1: one big MXU matmul for x @ Wx + b over all timesteps (parallel).
    Phase 2: fused recurrent kernel; Wh resident, state in VMEM scratch.
    """
    n_in, n_hid = params["n_in"], params["n_hid"]
    T, B, _ = xs.shape
    Hp = params["wh"].shape[0]
    Ip = params["wx"].shape[0]
    Bp = _round_up(B, _SUBLANE)
    G = 4 * Hp

    if hidden is None:
        hidden = jnp.zeros((B, n_hid), xs.dtype)
    if ctx is None:
        ctx = jnp.zeros((B, n_hid), xs.dtype)

    h_p = jnp.zeros((Bp, Hp), jnp.float32).at[:B, :n_hid].set(
        hidden.astype(jnp.float32))
    c_p = jnp.zeros((Bp, Hp), jnp.float32).at[:B, :n_hid].set(
        ctx.astype(jnp.float32))

    # ---- Phase 1: time-parallel input projection (bf16 MXU operands). ----
    rows = T * Bp                              # multiple of 8
    tm = min(rows, 256)                        # row tile (multiple of 8)
    rows_p = _round_up(rows, tm)

    x_p = jnp.zeros((T, Bp, Ip), jnp.bfloat16).at[:, :B, :n_in].set(
        xs.astype(jnp.bfloat16))
    x_flat = x_p.reshape(rows, Ip)
    if rows_p != rows:
        x_flat = jnp.zeros((rows_p, Ip), jnp.bfloat16).at[:rows].set(x_flat)

    xproj = pl.pallas_call(
        _input_proj_kernel,
        out_shape=jax.ShapeDtypeStruct((rows_p, G), jnp.float32),
        grid_spec=pltpu.PrefetchScalarGridSpec(
            num_scalar_prefetch=0,
            grid=(rows_p // tm,),
            in_specs=[
                pl.BlockSpec((tm, Ip), lambda m: (m, 0)),    # x rows (streamed)
                pl.BlockSpec((Ip, G), lambda m: (0, 0)),     # Wx (resident)
                pl.BlockSpec((1, G), lambda m: (0, 0)),      # bias (resident)
            ],
            out_specs=pl.BlockSpec((tm, G), lambda m: (m, 0)),
        ),
        compiler_params=pltpu.CompilerParams(
            dimension_semantics=("parallel",)),
    )(x_flat, params["wx"], params["b"])
    xproj = xproj[:rows].reshape(T, Bp, G)

    # ---- Phase 2: serial recurrence over time. ----
    grid_spec = pltpu.PrefetchScalarGridSpec(
        num_scalar_prefetch=0,
        grid=(T,),
        in_specs=[
            pl.BlockSpec((1, Bp, G), lambda t: (t, 0, 0)),   # xproj_t (streamed)
            pl.BlockSpec((Bp, Hp), lambda t: (0, 0)),        # h0      (resident)
            pl.BlockSpec((Bp, Hp), lambda t: (0, 0)),        # c0      (resident)
            pl.BlockSpec((Hp, G), lambda t: (0, 0)),         # Wh      (resident)
        ],
        out_specs=(
            pl.BlockSpec((1, Bp, Hp), lambda t: (t, 0, 0)),
            pl.BlockSpec((1, Bp, Hp), lambda t: (t, 0, 0)),
        ),
        scratch_shapes=[
            pltpu.VMEM((Bp, Hp), jnp.float32),   # hidden carried across steps
            pltpu.VMEM((Bp, Hp), jnp.float32),   # ctx carried across steps
        ],
    )

    hid_seq, ctx_seq = pl.pallas_call(
        _encoder_recurrent_kernel,
        out_shape=(jax.ShapeDtypeStruct((T, Bp, Hp), jnp.float32),
                   jax.ShapeDtypeStruct((T, Bp, Hp), jnp.float32)),
        grid_spec=grid_spec,
        compiler_params=pltpu.CompilerParams(
            dimension_semantics=("arbitrary",)),   # time carries state
    )(xproj, h_p, c_p, params["wh"])

    return (hid_seq[:, :B, :n_hid].astype(xs.dtype),
            ctx_seq[:, :B, :n_hid].astype(xs.dtype))


# --------------------------------------------------------------------------
# Parameters (PyTorch-like init) + pure-JAX reference
# --------------------------------------------------------------------------
def init_encoder_params(key, n_in, n_hid, n_out=None, dtype=jnp.float32,
                        mxu_dtype=jnp.bfloat16):
    """Shapes match the PyTorch module. `n_out` is unused by Encoder.forward."""
    del n_out
    keys = jax.random.split(key, 8)
    d_cat = n_in + n_hid
    bound = float(d_cat) ** -0.5

    def linear(kw, kb):
        w = jax.random.uniform(kw, (n_hid, d_cat), dtype, -bound, bound)
        b = jax.random.uniform(kb, (n_hid,), dtype, -bound, bound)
        return w, b

    wf, bf = linear(keys[0], keys[1])
    wi, bi = linear(keys[2], keys[3])
    wc, bc = linear(keys[4], keys[5])
    wo, bo = linear(keys[6], keys[7])
    raw = dict(wf=wf, bf=bf, wi=wi, bi=bi, wc=wc, bc=bc, wo=wo, bo=bo)

    Hp = _round_up(n_hid, _LANE)
    Ip = _round_up(n_in, _LANE)

    wh_blocks, wx_blocks, b_blocks = [], [], []
    for w, b in ((wf, bf), (wi, bi), (wc, bc), (wo, bo)):
        # cat order is (hidden, x): first n_hid columns act on hidden.
        wh = w[:, :n_hid].T                      # [n_hid, n_hid]
        wx = w[:, n_hid:].T                      # [n_in,  n_hid]
        wh_blocks.append(jnp.zeros((Hp, Hp), dtype).at[:n_hid, :n_hid].set(wh))
        wx_blocks.append(jnp.zeros((Ip, Hp), dtype).at[:n_in, :n_hid].set(wx))
        b_blocks.append(jnp.zeros((Hp,), jnp.float32).at[:n_hid].set(
            b.astype(jnp.float32)))

    params = {
        "wh": jnp.concatenate(wh_blocks, axis=1).astype(mxu_dtype),  # [Hp, 4Hp]
        "wx": jnp.concatenate(wx_blocks, axis=1).astype(mxu_dtype),  # [Ip, 4Hp]
        "b":  jnp.concatenate(b_blocks, axis=0)[None, :],            # [1, 4Hp] f32
        "n_in": n_in,
        "n_hid": n_hid,
    }
    return params, raw


def _reference_step(x, raw, hidden, ctx):
    """Pure-JAX Encoder.forward (bf16 MXU operands to match kernel numerics)."""
    cat = jnp.concatenate([hidden, x], axis=1).astype(jnp.bfloat16)

    def lin(w, b):
        return (jnp.dot(cat, w.T.astype(jnp.bfloat16),
                        preferred_element_type=jnp.float32)
                + b.astype(jnp.float32))

    f_t = jax.nn.sigmoid(lin(raw["wf"], raw["bf"]))
    i_t = jax.nn.sigmoid(lin(raw["wi"], raw["bi"]))
    c_t = jnp.tanh(lin(raw["wc"], raw["bc"]))
    o_t = jax.nn.sigmoid(lin(raw["wo"], raw["bo"]))
    ctx_new = f_t * ctx.astype(jnp.float32) + i_t * c_t
    hid_new = o_t * jnp.tanh(ctx_new)
    return hid_new, ctx_new


# --------------------------------------------------------------------------
if __name__ == "__main__":
    n_in, n_hid, n_out = 16, 32, 8
    B, T = 2, 8

    key = jax.random.PRNGKey(0)
    kp, kx, kh, kc = jax.random.split(key, 4)

    params, raw = init_encoder_params(kp, n_in, n_hid, n_out)
    x_seq = jax.random.normal(kx, (T, B, n_in), jnp.float32)
    hidden0 = jax.random.normal(kh, (B, n_hid), jnp.float32)
    ctx0 = jax.random.normal(kc, (B, n_hid), jnp.float32)

    # --- single-step cell (exact Encoder.forward semantics) ---
    hid1, ctx1 = encoder_forward(x_seq[0], params, hidden0, ctx0)
    jax.block_until_ready((hid1, ctx1))
    ref_h, ref_c = _reference_step(x_seq[0], raw, hidden0, ctx0)
    assert jnp.allclose(hid1, ref_h, atol=2e-3, rtol=2e-3)
    assert jnp.allclose(ctx1, ref_c, atol=2e-3, rtol=2e-3)

    # --- fused sequence path (time-parallel projection + recurrent kernel) ---
    hid_seq, ctx_seq = encoder_forward_sequence(x_seq, params, hidden0, ctx0)
    jax.block_until_ready((hid_seq, ctx_seq))

    h, c = hidden0, ctx0
    for t in range(T):
        h, c = _reference_step(x_seq[t], raw, h, c)
        assert jnp.allclose(hid_seq[t], h, atol=2e-3, rtol=2e-3), f"hid mismatch t={t}"
        assert jnp.allclose(ctx_seq[t], c, atol=2e-3, rtol=2e-3), f"ctx mismatch t={t}"

    print("KERNEL_OK")
</pallas_src>

<mosaic_0001>
module attributes {stable_mosaic.version = 11 : i64} {
  func.func @_encoder_cell_kernel(%arg0: memref<8x128xf32, #tpu.memory_space<vmem>>, %arg1: memref<8x128xf32, #tpu.memory_space<vmem>>, %arg2: memref<8x128xf32, #tpu.memory_space<vmem>>, %arg3: memref<128x512xbf16, #tpu.memory_space<vmem>>, %arg4: memref<128x512xbf16, #tpu.memory_space<vmem>>, %arg5: memref<1x512xf32, #tpu.memory_space<vmem>>, %arg6: memref<8x128xf32, #tpu.memory_space<vmem>>, %arg7: memref<8x128xf32, #tpu.memory_space<vmem>>) attributes {dimension_semantics = [], scalar_prefetch = 0 : i64, scratch_operands = 0 : i64, tpu.core_type = #tpu.core_type<tc>} {
    %c0 = arith.constant 0 : index
    %c0_0 = arith.constant 0 : index
    %0 = vector.load %arg1[%c0, %c0_0] : memref<8x128xf32, #tpu.memory_space<vmem>>, vector<8x128xf32>
    %1 = arith.truncf %0 : vector<8x128xf32> to vector<8x128xbf16>
    %c0_1 = arith.constant 0 : index
    %c0_2 = arith.constant 0 : index
    %2 = vector.load %arg4[%c0_1, %c0_2] : memref<128x512xbf16, #tpu.memory_space<vmem>>, vector<128x512xbf16>
    %cst = arith.constant dense<0.000000e+00> : vector<8x512xf32>
    %3 = tpu.matmul %1, %2, %cst {dimension_numbers = #tpu.dot_dimension_numbers<[1], [0], [0], [1], [0, 0, 1, 1], [], []>} : vector<8x128xbf16>, vector<128x512xbf16>, vector<8x512xf32> -> vector<8x512xf32>
    %c0_3 = arith.constant 0 : index
    %c0_4 = arith.constant 0 : index
    %4 = vector.load %arg0[%c0_3, %c0_4] : memref<8x128xf32, #tpu.memory_space<vmem>>, vector<8x128xf32>
    %5 = arith.truncf %4 : vector<8x128xf32> to vector<8x128xbf16>
    %c0_5 = arith.constant 0 : index
    %c0_6 = arith.constant 0 : index
    %6 = vector.load %arg3[%c0_5, %c0_6] : memref<128x512xbf16, #tpu.memory_space<vmem>>, vector<128x512xbf16>
    %cst_7 = arith.constant dense<0.000000e+00> : vector<8x512xf32>
    %7 = tpu.matmul %5, %6, %cst_7 {dimension_numbers = #tpu.dot_dimension_numbers<[1], [0], [0], [1], [0, 0, 1, 1], [], []>} : vector<8x128xbf16>, vector<128x512xbf16>, vector<8x512xf32> -> vector<8x512xf32>
    %8 = arith.addf %3, %7 : vector<8x512xf32>
    %c0_8 = arith.constant 0 : index
    %c0_9 = arith.constant 0 : index
    %9 = vector.load %arg5[%c0_8, %c0_9] : memref<1x512xf32, #tpu.memory_space<vmem>>, vector<1x512xf32>
    %10 = vector.broadcast %9 : vector<1x512xf32> to vector<8x512xf32>
    %11 = arith.addf %8, %10 : vector<8x512xf32>
    %12 = vector.extract_strided_slice %11 {offsets = [0, 0], sizes = [8, 128], strides = [1, 1]} : vector<8x512xf32> to vector<8x128xf32>
    %13 = arith.negf %12 : vector<8x128xf32>
    %14 = math.exp %13 : vector<8x128xf32>
    %cst_10 = arith.constant 1.000000e+00 : f32
    %15 = vector.broadcast %cst_10 : f32 to vector<8x128xf32>
    %16 = arith.addf %15, %14 : vector<8x128xf32>
    %17 = arith.divf %15, %16 : vector<8x128xf32>
    %18 = vector.extract_strided_slice %11 {offsets = [0, 128], sizes = [8, 128], strides = [1, 1]} : vector<8x512xf32> to vector<8x128xf32>
    %19 = arith.negf %18 : vector<8x128xf32>
    %20 = math.exp %19 : vector<8x128xf32>
    %cst_11 = arith.constant 1.000000e+00 : f32
    %21 = vector.broadcast %cst_11 : f32 to vector<8x128xf32>
    %22 = arith.addf %21, %20 : vector<8x128xf32>
    %23 = arith.divf %21, %22 : vector<8x128xf32>
    %24 = vector.extract_strided_slice %11 {offsets = [0, 256], sizes = [8, 128], strides = [1, 1]} : vector<8x512xf32> to vector<8x128xf32>
    %25 = math.tanh %24 : vector<8x128xf32>
    %26 = vector.extract_strided_slice %11 {offsets = [0, 384], sizes = [8, 128], strides = [1, 1]} : vector<8x512xf32> to vector<8x128xf32>
    %27 = arith.negf %26 : vector<8x128xf32>
    %28 = math.exp %27 : vector<8x128xf32>
    %cst_12 = arith.constant 1.000000e+00 : f32
    %29 = vector.broadcast %cst_12 : f32 to vector<8x128xf32>
    %30 = arith.addf %29, %28 : vector<8x128xf32>
    %31 = arith.divf %29, %30 : vector<8x128xf32>
    %c0_13 = arith.constant 0 : index
    %c0_14 = arith.constant 0 : index
    %32 = vector.load %arg2[%c0_13, %c0_14] : memref<8x128xf32, #tpu.memory_space<vmem>>, vector<8x128xf32>
    %33 = arith.mulf %17, %32 : vector<8x128xf32>
    %34 = arith.mulf %23, %25 : vector<8x128xf32>
    %35 = arith.addf %33, %34 : vector<8x128xf32>
    %36 = math.tanh %35 : vector<8x128xf32>
    %37 = arith.mulf %31, %36 : vector<8x128xf32>
    %c0_15 = arith.constant 0 : index
    %c0_16 = arith.constant 0 : index
    %38 = vector.load %arg6[%c0_15, %c0_16] : memref<8x128xf32, #tpu.memory_space<vmem>>, vector<8x128xf32>
    tpu.vector_store %arg6[%c0_15, %c0_16], %37 {strides = array<i32>} : memref<8x128xf32, #tpu.memory_space<vmem>>, vector<8x128xf32>,
    %c0_17 = arith.constant 0 : index
    %c0_18 = arith.constant 0 : index
    %39 = vector.load %arg7[%c0_17, %c0_18] : memref<8x128xf32, #tpu.memory_space<vmem>>, vector<8x128xf32>
    tpu.vector_store %arg7[%c0_17, %c0_18], %35 {strides = array<i32>} : memref<8x128xf32, #tpu.memory_space<vmem>>, vector<8x128xf32>,
    return
  }
}

</mosaic_0001>

<bundles_post_ra>
// kernel: tpu_custom_call.1
= control target key start
LH: loop header
LB: loop body
LE: loop exit
PB: predicated region body
PF: predicated region fallthrough
CT: control target
= control target key end

     0   :  { %13 = vsyncpa [#allocation3], 0  ;;  %s1266_s0 = inlined_call_operand.vmem [shape: f32[8,128], index: 0, kind: input, shape index: {}]   ;;  %s1267_s1 = inlined_call_operand.hbm [shape: f32[8,128], index: 1, kind: input, shape index: {}, may-alias: {1,6}]   ;;  %s1268_s2 = inlined_call_operand.hbm [shape: f32[8,128], index: 2, kind: input, shape index: {}, may-alias: {2,7}]   ;;  %s1269_s3 = inlined_call_operand.hbm [shape: bf16[128,512], index: 3, kind: input, shape index: {}]   ;;  %s1270_s4 = inlined_call_operand.hbm [shape: bf16[128,512], index: 4, kind: input, shape index: {}]   ;;  %s1271_s5 = inlined_call_operand.vmem [shape: f32[1,512], index: 5, kind: input, shape index: {}]   ;;  %s1272_s6 = inlined_call_operand.hbm [shape: f32[8,128], index: 6, kind: output, shape index: {0}, may-alias: {1,6}]   ;;  %s1273_s7 = inlined_call_operand.hbm [shape: f32[8,128], index: 7, kind: output, shape index: {1}, may-alias: {2,7}]  }
   0x1   :  { %14 = vsyncpa [#allocation6], 0 }
   0x2   :  { %15 = vsyncpa [#allocation9], 0 }
   0x3   :  { %16 = vsyncpa [#allocation4], 0  ;;  %s36_s26 = sshll.u32 %s1268_s2, 4  ;;  %s37_s26 = int_to_ptr.hbm [resolvable:$true] %s36_s26 }
   0x4   :  { %17 = vsyncpa [#allocation12], 0  ;;  %s1194_s27 = smov [#allocation5]   ;;  %s25_s8 = sshll.u32 %s1267_s1, 4  ;;  %s26_s8 = int_to_ptr.hbm [resolvable:$true] %s25_s8 }
   0x5   :  { %s38_s28 = sshll.u32 %s1194_s27, 4  ;;  %s1195_s9 = smov [#allocation2]   ;;  %s39_s28 = int_to_ptr.vmem [resolvable:$true] %s38_s28 }
   0x6   :  { %41 = dma.hbm_to_vmem [thread:$0]  %s37_s26, 128, %s39_s28, [#allocation6]  }
   0x7   :  { %s27_s10 = sshll.u32 %s1195_s9, 4  ;;  %s46_s13 = sshll.u32 %s1269_s3, 4  ;;  %s28_s10 = int_to_ptr.vmem [resolvable:$true] %s27_s10  ;;  %s47_s13 = int_to_ptr.hbm [resolvable:$true] %s46_s13 }
   0x8   :  { %30 = dma.hbm_to_vmem [thread:$0]  %s26_s8, 128, %s28_s10, [#allocation3]  }
   0x9   :  { %s1196_s2 = smov [#allocation7]   ;;  %s59_s17 = sshll.u32 %s1270_s4, 4  ;;  %s60_s17 = int_to_ptr.hbm [resolvable:$true] %s59_s17 }
   0xa   :  { %s48_s14 = sshll.u32 %s1196_s2, 4  ;;  %s1197_s18 = smov 256   ;;  %s49_s14 = int_to_ptr.vmem [resolvable:$true] %s48_s14 }
   0xb   :  { %s1198_s1 = smov 16   ;;  %s1199_s19 = smov [#allocation8]  }
   0xc   :  { %54 = dma.hbm_to_vmem [thread:$0]  %s47_s13, 4096, %s49_s14, [#allocation6], %s1197_s18, %s1197_s18, %s1198_s1  }
   0xd   :  { %s61_s20 = sshll.u32 %s1199_s19, 4  ;;  %s62_s20 = int_to_ptr.vmem [resolvable:$true] %s61_s20 }
   0xe   :  { %67 = dma.hbm_to_vmem [thread:$0]  %s60_s17, 4096, %s62_s20, [#allocation9], %s1197_s18, %s1197_s18, %s1198_s1  }
   0xf   :  { %1184 = dma.done.wait [#allocation3], 128  }
  0x10   :  { %1185 = vsyncadd [#allocation3], 4294967168 }
  0x11   :  { %1186 = dma.done.wait [#allocation6], 4224  }
  0x12   :  { %1187 = vsyncadd [#allocation6], 4294963072 }
  0x13   :  { %1188 = dma.done.wait [#allocation9], 4096  }
  0x14   :  { %1189 = vsyncadd [#allocation9], 4294963200  ;;  %v807_v0 = vld [vmem:[#allocation7 + $0xe0] sm:$0xf]  ;;  %v1014_v1 = vld [vmem:[#allocation7 + $0xec] sm:$0xf0] }
  0x15   :  { %v1012_v2 = vld [vmem:[#allocation7 + $0xe4] sm:$0xf]  ;;  %v808_v3 = vor.u32 %v1014_v1, %v807_v0  ;;  %v809_v4 = vld [vmem:[#allocation7 + $0xf0] sm:$0xf0]  ;;  %v815_v5 = vld [vmem:[#allocation7 + $0xe8] sm:$0xf] }
  0x16   :  { %v1015_v6 = vld [vmem:[#allocation7 + $0xf4] sm:$0xf0]  ;;  %v812_v7 = vor.u32 %v1012_v2, %v809_v4  ;;  %v1013_v9 = vld [vmem:[#allocation7 + $0xec] sm:$0xf]  ;;  %v817_v10 = vld [vmem:[#allocation7 + $0xf8] sm:$0xf0] }
  0x17   :  { %v816_v8 = vor.u32 %v1015_v6, %v815_v5  ;;  %v791_v11 = vld [vmem:[#allocation7 + $0xc0] sm:$0xf]  ;;  %314 = vmatpush.bf16.msra.mxu0 %v808_v3  ;;  %v820_v12 = vor.u32 %v1013_v9, %v817_v10  ;;  %v1010_v13 = vld [vmem:[#allocation7 + $0xcc] sm:$0xf0]  ;;  %v1008_v14 = vld [vmem:[#allocation7 + $0xc4] sm:$0xf] }
  0x18   :  { %v793_v15 = vld [vmem:[#allocation7 + $0xd0] sm:$0xf0]  ;;  %327 = vmatpush.bf16.msra.mxu1 %v812_v7  ;;  %v792_v16 = vor.u32 %v1010_v13, %v791_v11  ;;  %v799_v18 = vld [vmem:[#allocation7 + $0xc8] sm:$0xf]  ;;  %v1011_v19 = vld [vmem:[#allocation7 + $0xd4] sm:$0xf0] }
  0x19   :  { %340 = vmatpush.bf16.msra.mxu2 %v816_v8  ;;  %v796_v17 = vor.u32 %v1008_v14, %v793_v15  ;;  %v1009_v20 = vld [vmem:[#allocation7 + $0xcc] sm:$0xf]  ;;  %353 = vmatpush.bf16.msra.mxu3 %v820_v12  ;;  %v800_v21 = vor.u32 %v1011_v19, %v799_v18  ;;  %v801_v22 = vld [vmem:[#allocation7 + $0xd8] sm:$0xf0]  ;;  %v775_v23 = vld [vmem:[#allocation7 + $0xa0] sm:$0xf] }
  0x1a   :  { %v1006_v24 = vld [vmem:[#allocation7 + $0xac] sm:$0xf0]  ;;  %v804_v25 = vor.u32 %v1009_v20, %v801_v22  ;;  %v1004_v26 = vld [vmem:[#allocation7 + $0xa4] sm:$0xf]  ;;  %v777_v27 = vld [vmem:[#allocation7 + $0xb0] sm:$0xf0] }
  0x1b   :  { %v783_v28 = vld [vmem:[#allocation7 + $0xa8] sm:$0xf]  ;;  %315 = vmatpush.bf16.msra.mxu0 %v792_v16  ;;  %v776_v29 = vor.u32 %v1006_v24, %v775_v23  ;;  %v1007_v30 = vld [vmem:[#allocation7 + $0xb4] sm:$0xf0]  ;;  %v1005_v31 = vld [vmem:[#allocation7 + $0xac] sm:$0xf]  ;;  %v780_v33 = vor.u32 %v1004_v26, %v777_v27 }
  0x1c   :  { %v785_v32 = vld [vmem:[#allocation7 + $0xb8] sm:$0xf0]  ;;  %328 = vmatpush.bf16.msra.mxu1 %v796_v17  ;;  %v784_v34 = vor.u32 %v1007_v30, %v783_v28  ;;  %v759_v35 = vld [vmem:[#allocation7 + $0x80] sm:$0xf]  ;;  %v1002_v36 = vld [vmem:[#allocation7 + $0x8c] sm:$0xf0] }
  0x1d   :  { %341 = vmatpush.bf16.msra.mxu2 %v800_v21  ;;  %v1000_v37 = vld [vmem:[#allocation7 + $0x84] sm:$0xf]  ;;  %354 = vmatpush.bf16.msra.mxu3 %v804_v25  ;;  %v788_v38 = vor.u32 %v1005_v31, %v785_v32  ;;  %v761_v39 = vld [vmem:[#allocation7 + $0x90] sm:$0xf0]  ;;  %v767_v40 = vld [vmem:[#allocation7 + $0x88] sm:$0xf]  ;;  %v760_v44 = vor.u32 %v1002_v36, %v759_v35 }
  0x1e   :  { %v1003_v41 = vld [vmem:[#allocation7 + $0x94] sm:$0xf0]  ;;  %v1001_v42 = vld [vmem:[#allocation7 + $0x8c] sm:$0xf]  ;;  %v769_v43 = vld [vmem:[#allocation7 + $0x98] sm:$0xf0]  ;;  %v764_v45 = vor.u32 %v1000_v37, %v761_v39 }
  0x1f   :  { %316 = vmatpush.bf16.msra.mxu0 %v776_v29  ;;  %v768_v46 = vor.u32 %v1003_v41, %v767_v40  ;;  %v743_v47 = vld [vmem:[#allocation7 + $0x60] sm:$0xf]  ;;  %v998_v48 = vld [vmem:[#allocation7 + $0x6c] sm:$0xf0]  ;;  %v996_v49 = vld [vmem:[#allocation7 + $0x64] sm:$0xf]  ;;  %v772_v50 = vor.u32 %v1001_v42, %v769_v43 }
  0x20   :  { %329 = vmatpush.bf16.msra.mxu1 %v780_v33  ;;  %v745_v51 = vld [vmem:[#allocation7 + $0x70] sm:$0xf0]  ;;  %v751_v52 = vld [vmem:[#allocation7 + $0x68] sm:$0xf]  ;;  %v999_v53 = vld [vmem:[#allocation7 + $0x74] sm:$0xf0]  ;;  %v744_v56 = vor.u32 %v998_v48, %v743_v47 }
  0x21   :  { %342 = vmatpush.bf16.msra.mxu2 %v784_v34  ;;  %355 = vmatpush.bf16.msra.mxu3 %v788_v38  ;;  %v997_v54 = vld [vmem:[#allocation7 + $0x6c] sm:$0xf]  ;;  %v753_v55 = vld [vmem:[#allocation7 + $0x78] sm:$0xf0]  ;;  %v748_v57 = vor.u32 %v996_v49, %v745_v51  ;;  %v752_v58 = vor.u32 %v999_v53, %v751_v52  ;;  %v727_v59 = vld [vmem:[#allocation7 + $0x40] sm:$0xf] }
  0x22   :  { %v994_v60 = vld [vmem:[#allocation7 + $0x4c] sm:$0xf0]  ;;  %v992_v61 = vld [vmem:[#allocation7 + $0x44] sm:$0xf]  ;;  %v756_v62 = vor.u32 %v997_v54, %v753_v55  ;;  %v729_v63 = vld [vmem:[#allocation7 + $0x50] sm:$0xf0] }
  0x23   :  { %317 = vmatpush.bf16.msra.mxu0 %v760_v44  ;;  %v735_v0 = vld [vmem:[#allocation7 + $0x48] sm:$0xf]  ;;  %v995_v1 = vld [vmem:[#allocation7 + $0x54] sm:$0xf0]  ;;  %v993_v2 = vld [vmem:[#allocation7 + $0x4c] sm:$0xf]  ;;  %v728_v4 = vor.u32 %v994_v60, %v727_v59  ;;  %v732_v5 = vor.u32 %v992_v61, %v729_v63 }
  0x24   :  { %330 = vmatpush.bf16.msra.mxu1 %v764_v45  ;;  %v737_v3 = vld [vmem:[#allocation7 + $0x58] sm:$0xf0]  ;;  %v736_v6 = vor.u32 %v995_v1, %v735_v0  ;;  %v711_v7 = vld [vmem:[#allocation7 + $0x20] sm:$0xf]  ;;  %v990_v8 = vld [vmem:[#allocation7 + $0x2c] sm:$0xf0] }
  0x25   :  { %343 = vmatpush.bf16.msra.mxu2 %v768_v46  ;;  %356 = vmatpush.bf16.msra.mxu3 %v772_v50  ;;  %v988_v9 = vld [vmem:[#allocation7 + $0x24] sm:$0xf]  ;;  %v740_v10 = vor.u32 %v993_v2, %v737_v3  ;;  %v713_v11 = vld [vmem:[#allocation7 + $0x30] sm:$0xf0]  ;;  %v719_v12 = vld [vmem:[#allocation7 + $0x28] sm:$0xf]  ;;  %v712_v16 = vor.u32 %v990_v8, %v711_v7 }
  0x26   :  { %v991_v13 = vld [vmem:[#allocation7 + $0x34] sm:$0xf0]  ;;  %v989_v14 = vld [vmem:[#allocation7 + $0x2c] sm:$0xf]  ;;  %v721_v15 = vld [vmem:[#allocation7 + $0x38] sm:$0xf0]  ;;  %v716_v19 = vor.u32 %v988_v9, %v713_v11 }
  0x27   :  { %318 = vmatpush.bf16.msra.mxu0 %v744_v56  ;;  %v695_v17 = vld [vmem:[#allocation7] sm:$0xf]  ;;  %v986_v18 = vld [vmem:[#allocation7 + $0xc] sm:$0xf0]  ;;  %v720_v20 = vor.u32 %v991_v13, %v719_v12  ;;  %v984_v21 = vld [vmem:[#allocation7 + $0x4] sm:$0xf]  ;;  %v724_v24 = vor.u32 %v989_v14, %v721_v15 }
  0x28   :  { %331 = vmatpush.bf16.msra.mxu1 %v748_v57  ;;  %v697_v22 = vld [vmem:[#allocation7 + $0x10] sm:$0xf0]  ;;  %v703_v23 = vld [vmem:[#allocation7 + $0x8] sm:$0xf]  ;;  %v987_v25 = vld [vmem:[#allocation7 + $0x14] sm:$0xf0]  ;;  %v696_v31 = vor.u32 %v986_v18, %v695_v17 }
  0x29   :  { %344 = vmatpush.bf16.msra.mxu2 %v752_v58  ;;  %357 = vmatpush.bf16.msra.mxu3 %v756_v62  ;;  %v985_v26 = vld [vmem:[#allocation7 + $0xc] sm:$0xf]  ;;  %v705_v27 = vld [vmem:[#allocation7 + $0x18] sm:$0xf0]  ;;  %v935_v28 = vld [vmem:[#allocation8 + $0xe0] sm:$0xf]  ;;  %v700_v35 = vor.u32 %v984_v21, %v697_v22  ;;  %v704_v36 = vor.u32 %v987_v25, %v703_v23 }
  0x2a   :  { %v982_v29 = vld [vmem:[#allocation8 + $0xec] sm:$0xf0]  ;;  %v980_v30 = vld [vmem:[#allocation8 + $0xe4] sm:$0xf]  ;;  %v937_v32 = vld [vmem:[#allocation8 + $0xf0] sm:$0xf0]  ;;  %v708_v40 = vor.u32 %v985_v26, %v705_v27 }
  0x2b   :  { %319 = vmatpush.bf16.msra.mxu0 %v728_v4  ;;  %v943_v33 = vld [vmem:[#allocation8 + $0xe8] sm:$0xf]  ;;  %v983_v34 = vld [vmem:[#allocation8 + $0xf4] sm:$0xf0]  ;;  %v981_v37 = vld [vmem:[#allocation8 + $0xec] sm:$0xf]  ;;  %v936_v41 = vor.u32 %v982_v29, %v935_v28  ;;  %v940_v42 = vor.u32 %v980_v30, %v937_v32 }
  0x2c   :  { %332 = vmatpush.bf16.msra.mxu1 %v732_v5  ;;  %v945_v38 = vld [vmem:[#allocation8 + $0xf8] sm:$0xf0]  ;;  %v120_v39 = vld [vmem:[%s1266_s0] sm:$0xff]  ;;  %v944_v43 = vor.u32 %v983_v34, %v943_v33  ;;  %v919_v44 = vld [vmem:[#allocation8 + $0xc0] sm:$0xf]  ;;  %s676_s25 = sshll.u32 %s1273_s7, 4  ;;  %s677_s25 = int_to_ptr.hbm [resolvable:$true] %s676_s25 }
  0x2d   :  { %345 = vmatpush.bf16.msra.mxu2 %v736_v6  ;;  %358 = vmatpush.bf16.msra.mxu3 %v740_v10  ;;  %v978_v45 = vld [vmem:[#allocation8 + $0xcc] sm:$0xf0]  ;;  %v976_v46 = vld [vmem:[#allocation8 + $0xc4] sm:$0xf]  ;;  %v948_v47 = vor.u32 %v981_v37, %v945_v38  ;;  %v921_v48 = vld [vmem:[#allocation8 + $0xd0] sm:$0xf0]  ;;  %v121_v51 = vpack.c.bf16 %v120_v39, %v120_v39 }
  0x2e   :  { %v927_v49 = vld [vmem:[#allocation8 + $0xc8] sm:$0xf]  ;;  %v979_v50 = vld [vmem:[#allocation8 + $0xd4] sm:$0xf0]  ;;  %v977_v52 = vld [vmem:[#allocation8 + $0xcc] sm:$0xf]  ;;  %v920_v54 = vor.u32 %v978_v45, %v919_v44  ;;  %v924_v55 = vor.u32 %v976_v46, %v921_v48 }
  0x2f   :  { %320 = vmatpush.bf16.msra.mxu0 %v712_v16  ;;  %v929_v53 = vld [vmem:[#allocation8 + $0xd8] sm:$0xf0]  ;;  %v928_v56 = vor.u32 %v979_v50, %v927_v49  ;;  %v903_v57 = vld [vmem:[#allocation8 + $0xa0] sm:$0xf]  ;;  %v974_v58 = vld [vmem:[#allocation8 + $0xac] sm:$0xf0] }
  0x30   :  { %333 = vmatpush.bf16.msra.mxu1 %v716_v19  ;;  %v972_v59 = vld [vmem:[#allocation8 + $0xa4] sm:$0xf]  ;;  %v932_v60 = vor.u32 %v977_v52, %v929_v53  ;;  %v905_v61 = vld [vmem:[#allocation8 + $0xb0] sm:$0xf0]  ;;  %v911_v62 = vld [vmem:[#allocation8 + $0xa8] sm:$0xf]  ;;  %v904_v2 = vor.u32 %v974_v58, %v903_v57 }
  0x31   :  { %346 = vmatpush.bf16.msra.mxu2 %v720_v20  ;;  %359 = vmatpush.bf16.msra.mxu3 %v724_v24  ;;  %v975_v63 = vld [vmem:[#allocation8 + $0xb4] sm:$0xf0]  ;;  %v973_v0 = vld [vmem:[#allocation8 + $0xac] sm:$0xf]  ;;  %v913_v1 = vld [vmem:[#allocation8 + $0xb8] sm:$0xf0]  ;;  %v908_v3 = vor.u32 %v972_v59, %v905_v61 }
  0x32   :  { %v912_v4 = vor.u32 %v975_v63, %v911_v62  ;;  %v887_v5 = vld [vmem:[#allocation8 + $0x80] sm:$0xf]  ;;  %v970_v6 = vld [vmem:[#allocation8 + $0x8c] sm:$0xf0]  ;;  %v968_v7 = vld [vmem:[#allocation8 + $0x84] sm:$0xf]  ;;  %v916_v8 = vor.u32 %v973_v0, %v913_v1 }
  0x33   :  { %321 = vmatpush.bf16.msra.mxu0 %v696_v31  ;;  %v889_v9 = vld [vmem:[#allocation8 + $0x90] sm:$0xf0]  ;;  %v895_v10 = vld [vmem:[#allocation8 + $0x88] sm:$0xf]  ;;  %v971_v11 = vld [vmem:[#allocation8 + $0x94] sm:$0xf0]  ;;  %v888_v14 = vor.u32 %v970_v6, %v887_v5 }
  0x34   :  { %334 = vmatpush.bf16.msra.mxu1 %v700_v35  ;;  %v969_v12 = vld [vmem:[#allocation8 + $0x8c] sm:$0xf]  ;;  %v897_v13 = vld [vmem:[#allocation8 + $0x98] sm:$0xf0]  ;;  %v892_v15 = vor.u32 %v968_v7, %v889_v9  ;;  %v896_v16 = vor.u32 %v971_v11, %v895_v10  ;;  %v871_v17 = vld [vmem:[#allocation8 + $0x60] sm:$0xf] }
  0x35   :  { %347 = vmatpush.bf16.msra.mxu2 %v704_v36  ;;  %360 = vmatpush.bf16.msra.mxu3 %v708_v40  ;;  %v966_v18 = vld [vmem:[#allocation8 + $0x6c] sm:$0xf0]  ;;  %v964_v19 = vld [vmem:[#allocation8 + $0x64] sm:$0xf]  ;;  %v900_v20 = vor.u32 %v969_v12, %v897_v13  ;;  %v873_v21 = vld [vmem:[#allocation8 + $0x70] sm:$0xf0] }
  0x36   :  { %322 = vmatmul.bf16.vlgmr.msra.gmra.mxu0 %v121_v51  ;;  %v879_v22 = vld [vmem:[#allocation8 + $0x68] sm:$0xf]  ;;  %v967_v23 = vld [vmem:[#allocation8 + $0x74] sm:$0xf0]  ;;  %v965_v24 = vld [vmem:[#allocation8 + $0x6c] sm:$0xf]  ;;  %v872_v26 = vor.u32 %v966_v18, %v871_v17  ;;  %v876_v27 = vor.u32 %v964_v19, %v873_v21 }
  0x37   :  { %526 = vmatpush.bf16.msrb.mxu0 %v936_v41  ;;  %335 = vmatmul.bf16.vlgmr.msra.gmra.mxu1 %v121_v51  ;;  %v881_v25 = vld [vmem:[#allocation8 + $0x78] sm:$0xf0]  ;;  %v880_v28 = vor.u32 %v967_v23, %v879_v22  ;;  %v855_v29 = vld [vmem:[#allocation8 + $0x40] sm:$0xf]  ;;  %v962_v30 = vld [vmem:[#allocation8 + $0x4c] sm:$0xf0] }
  0x38   :  { %539 = vmatpush.bf16.msrb.mxu1 %v940_v42  ;;  %361 = vmatmul.bf16.vlgmr.msra.gmra.mxu3 %v121_v51  ;;  %v960_v31 = vld [vmem:[#allocation8 + $0x44] sm:$0xf]  ;;  %v884_v32 = vor.u32 %v965_v24, %v881_v25  ;;  %v857_v33 = vld [vmem:[#allocation8 + $0x50] sm:$0xf0]  ;;  %v863_v34 = vld [vmem:[#allocation8 + $0x48] sm:$0xf]  ;;  %v856_v38 = vor.u32 %v962_v30, %v855_v29 }
  0x39   :  { %552 = vmatpush.bf16.msrb.mxu2 %v944_v43  ;;  %565 = vmatpush.bf16.msrb.mxu3 %v948_v47  ;;  %v963_v35 = vld [vmem:[#allocation8 + $0x54] sm:$0xf0]  ;;  %v961_v36 = vld [vmem:[#allocation8 + $0x4c] sm:$0xf]  ;;  %v865_v37 = vld [vmem:[#allocation8 + $0x58] sm:$0xf0]  ;;  %v860_v39 = vor.u32 %v960_v31, %v857_v33 }
  0x3a   :  { %348 = vmatmul.bf16.vlgmr.msra.gmra.mxu2 %v121_v51  ;;  %v864_v40 = vor.u32 %v963_v35, %v863_v34  ;;  %v839_v41 = vld [vmem:[#allocation8 + $0x20] sm:$0xf]  ;;  %v958_v42 = vld [vmem:[#allocation8 + $0x2c] sm:$0xf0]  ;;  %v956_v43 = vld [vmem:[#allocation8 + $0x24] sm:$0xf]  ;;  %v868_v44 = vor.u32 %v961_v36, %v865_v37 }
  0x3b   :  { %527 = vmatpush.bf16.msrb.mxu0 %v920_v54  ;;  %v841_v45 = vld [vmem:[#allocation8 + $0x30] sm:$0xf0]  ;;  %v847_v46 = vld [vmem:[#allocation8 + $0x28] sm:$0xf]  ;;  %v959_v47 = vld [vmem:[#allocation8 + $0x34] sm:$0xf0]  ;;  %v840_v50 = vor.u32 %v958_v42, %v839_v41 }
  0x3c   :  { %540 = vmatpush.bf16.msrb.mxu1 %v924_v55  ;;  %v957_v48 = vld [vmem:[#allocation8 + $0x2c] sm:$0xf]  ;;  %v849_v49 = vld [vmem:[#allocation8 + $0x38] sm:$0xf0]  ;;  %v844_v51 = vor.u32 %v956_v43, %v841_v45  ;;  %v848_v52 = vor.u32 %v959_v47, %v847_v46  ;;  %v823_v53 = vld [vmem:[#allocation8] sm:$0xf] }
  0x3d   :  { %553 = vmatpush.bf16.msrb.mxu2 %v928_v56  ;;  %566 = vmatpush.bf16.msrb.mxu3 %v932_v60  ;;  %v954_v54 = vld [vmem:[#allocation8 + $0xc] sm:$0xf0]  ;;  %v952_v55 = vld [vmem:[#allocation8 + $0x4] sm:$0xf]  ;;  %v852_v56 = vor.u32 %v957_v48, %v849_v49  ;;  %v825_v57 = vld [vmem:[#allocation8 + $0x10] sm:$0xf0] }
  0x3e   :  { %v831_v58 = vld [vmem:[#allocation8 + $0x8] sm:$0xf]  ;;  %v955_v59 = vld [vmem:[#allocation8 + $0x14] sm:$0xf0]  ;;  %v953_v60 = vld [vmem:[#allocation8 + $0xc] sm:$0xf]  ;;  %v824_v62 = vor.u32 %v954_v54, %v823_v53  ;;  %v828_v0 = vor.u32 %v952_v55, %v825_v57 }
  0x3f   :  { %528 = vmatpush.bf16.msrb.mxu0 %v904_v2  ;;  %v833_v61 = vld [vmem:[#allocation8 + $0x18] sm:$0xf0]  ;;  %v86_v63 = vld [vmem:[#allocation2] sm:$0xff]  ;;  %v832_v1 = vor.u32 %v955_v59, %v831_v58  ;;  %s1201_s26 = smov [#allocation10]   ;;  %s665_s29 = sshll.u32 %s1272_s6, 4  ;;  %s666_s29 = int_to_ptr.hbm [resolvable:$true] %s665_s29 }
  0x40   :  { %541 = vmatpush.bf16.msrb.mxu1 %v908_v3  ;;  %v836_v2 = vor.u32 %v953_v60, %v833_v61  ;;  %v87_v3 = vpack.c.bf16 %v86_v63, %v86_v63  ;;  %v578_v12 = vld [vmem:[%s1271_s5] sm:$0xf]  ;;  %v650_v58 = vld [vmem:[#allocation5] sm:$0xff]  ;;  %s1200_s5 = smov [#allocation11]   ;;  %s663_s27 = sshll.u32 %s1201_s26, 4  ;;  %s664_s27 = int_to_ptr.vmem [resolvable:$true] %s663_s27 }
  0x41   :  { %554 = vmatpush.bf16.msrb.mxu2 %v912_v4  ;;  %567 = vmatpush.bf16.msrb.mxu3 %v916_v8  ;;  %v580_v13 = vperm.slane %v578_v12, 0  ;;  %v583_v24 = vperm.slane %v578_v12, 3  ;;  %s674_s22 = sshll.u32 %s1200_s5, 4  ;;  %s675_s22 = int_to_ptr.vmem [resolvable:$true] %s674_s22 }
  0x43   :  { %529 = vmatpush.bf16.msrb.mxu0 %v888_v14 }
  0x44   :  { %542 = vmatpush.bf16.msrb.mxu1 %v892_v15  ;;  %v581_v15 = vperm.slane %v578_v12, 1 }
  0x45   :  { %555 = vmatpush.bf16.msrb.mxu2 %v896_v16  ;;  %568 = vmatpush.bf16.msrb.mxu3 %v900_v20 }
  0x47   :  { %530 = vmatpush.bf16.msrb.mxu0 %v872_v26 }
  0x48   :  { %543 = vmatpush.bf16.msrb.mxu1 %v876_v27 }
  0x49   :  { %556 = vmatpush.bf16.msrb.mxu2 %v880_v28  ;;  %569 = vmatpush.bf16.msrb.mxu3 %v884_v32 }
  0x4b   :  { %531 = vmatpush.bf16.msrb.mxu0 %v856_v38  ;;  %v582_v38 = vperm.slane %v578_v12, 2 }
  0x4c   :  { %544 = vmatpush.bf16.msrb.mxu1 %v860_v39 }
  0x4d   :  { %557 = vmatpush.bf16.msrb.mxu2 %v864_v40  ;;  %570 = vmatpush.bf16.msrb.mxu3 %v868_v44 }
  0x4f   :  { %532 = vmatpush.bf16.msrb.mxu0 %v840_v50 }
  0x50   :  { %545 = vmatpush.bf16.msrb.mxu1 %v844_v51 }
  0x51   :  { %558 = vmatpush.bf16.msrb.mxu2 %v848_v52  ;;  %571 = vmatpush.bf16.msrb.mxu3 %v852_v56 }
  0x53   :  { %533 = vmatpush.bf16.msrb.mxu0 %v824_v62 }
  0x54   :  { %546 = vmatpush.bf16.msrb.mxu1 %v828_v0 }
  0x55   :  { %559 = vmatpush.bf16.msrb.mxu2 %v832_v1  ;;  %572 = vmatpush.bf16.msrb.mxu3 %v836_v2 }
  0x56   :  { %534 = vmatmul.bf16.vlgmr.msrb.gmra.mxu0 %v87_v3 }
  0x57   :  { %547 = vmatmul.bf16.vlgmr.msrb.gmra.mxu1 %v87_v3 }
  0x58   :  { %560 = vmatmul.bf16.vlgmr.msrb.gmra.mxu2 %v87_v3  ;;  %573 = vmatmul.bf16.vlgmr.msrb.gmra.mxu3 %v87_v3 }
  0xb3   :  { %v323_v4 = vpop.f32.mrf.mxu0 }
  0xb4   :  { %v336_v5 = vpop.f32.mrf.mxu1 }
  0xbb   :  { %v362_v6 = vpop.f32.mrf.mxu3  ;;  %v325_v7 = vpop.f32.mrf.mxu0 }
  0xbc   :  { %v338_v9 = vpop.f32.mrf.mxu1 }
  0xbd   :  { %v349_v8 = vpop.f32.mrf.mxu2 }
  0xc3   :  { %v364_v10 = vpop.f32.mrf.mxu3 }
  0xc5   :  { %v351_v11 = vpop.f32.mrf.mxu2 }
  0xd3   :  { %v535_v14 = vpop.f32.mrf.mxu0 }
  0xd4   :  { %v536_v16 = vadd.f32 %v535_v14, %v323_v4  ;;  %v548_v17 = vpop.f32.mrf.mxu1 }
  0xd5   :  { %v549_v18 = vadd.f32 %v548_v17, %v336_v5 }
  0xd6   :  { %v588_v19 = vadd.f32 %v580_v13, %v536_v16 }
  0xd7   :  { %v589_v20 = vadd.f32 %v581_v15, %v549_v18 }
  0xd8   :  { %v949_v21 = vmul.f32 -1.442695, %v588_v19 }
  0xd9   :  { %v950_v22 = vmul.f32 -1.442695, %v589_v20 }
  0xda   :  { %1024 = vpow2.f32 %v949_v21 }
  0xdb   :  { %v561_v23 = vpop.f32.mrf.mxu2  ;;  %1026 = vpow2.f32 %v950_v22  ;;  %v574_v25 = vpop.f32.mrf.mxu3 }
  0xdc   :  { %v537_v26 = vpop.f32.mrf.mxu0  ;;  %v575_v27 = vadd.f32 %v574_v25, %v362_v6  ;;  %v550_v28 = vpop.f32.mrf.mxu1  ;;  %v562_v37 = vadd.f32 %v561_v23, %v349_v8 }
  0xde   :  { %v591_v29 = vadd.f32 %v583_v24, %v575_v27  ;;  %v590_v41 = vadd.f32 %v582_v38, %v562_v37 }
  0xe0   :  { %v1025_v30 = vpop.eup %1024  ;;  %v951_v31 = vmul.f32 -1.442695, %v591_v29 }
  0xe1   :  { %v1027_v32 = vpop.eup %1026  ;;  %v595_v33 = vadd.f32 1.0, %v1025_v30 }
  0xe2   :  { %v614_v34 = vadd.f32 1.0, %v1027_v32  ;;  %1028 = vpow2.f32 %v951_v31 }
  0xe3   :  { %v563_v35 = vpop.f32.mrf.mxu2  ;;  %1030 = vrcp.f32 %v595_v33  ;;  %v576_v36 = vpop.f32.mrf.mxu3  ;;  %v607_v47 = vand.u32 2147483648, %v595_v33  ;;  %v605_v50 = vand.u32 2147483647, %v595_v33  ;;  %vm601_vm2 = vweird.f32 %v595_v33 }
  0xe4   :  { %1032 = vrcp.f32 %v614_v34  ;;  %v626_v51 = vand.u32 2147483648, %v614_v34  ;;  %v624_v53 = vand.u32 2147483647, %v614_v34  ;;  %vm620_vm4 = vweird.f32 %v614_v34 }
  0xe5   :  { %v608_v56 = vor.u32 1.1754944e-38, %v607_v47  ;;  %vm606_vm5 = vcmp.eq.f32.partialorder %v605_v50, 8.507059e+37 }
  0xe6   :  { %v627_v60 = vor.u32 1.1754944e-38, %v626_v51  ;;  %vm625_vm7 = vcmp.eq.f32.partialorder %v624_v53, 8.507059e+37 }
  0xe8   :  { %v1029_v39 = vpop.eup %1028 }
  0xe9   :  { %v1031_v40 = vpop.eup %1030  ;;  %v634_v42 = vadd.f32 1.0, %v1029_v39 }
  0xea   :  { %v1033_v43 = vpop.eup %1032  ;;  %v597_v44 = vmul.f32 %v1031_v40, %v595_v33  ;;  %vm602_vm0 = vweird.f32 %v1031_v40 }
  0xeb   :  { %v616_v45 = vmul.f32 %v1033_v43, %v614_v34  ;;  %1034 = vrcp.f32 %v634_v42  ;;  %vm621_vm1 = vweird.f32 %v1033_v43  ;;  %vm603_vm3 = vmor %vm601_vm2, %vm602_vm0  ;;  %v646_v8 = vand.u32 2147483648, %v634_v42 }
  0xec   :  { %v598_v46 = vsub.f32 1.0, %v597_v44  ;;  %1036 = vtanh.f32 %v590_v41  ;;  %vm622_vm6 = vmor %vm620_vm4, %vm621_vm1  ;;  %vm640_vm9 = vweird.f32 %v634_v42  ;;  %v644_v9 = vand.u32 2147483647, %v634_v42 }
  0xed   :  { %v617_v48 = vsub.f32 1.0, %v616_v45  ;;  %v647_v11 = vor.u32 1.1754944e-38, %v646_v8 }
  0xee   :  { %v599_v49 = vmul.f32 %v1031_v40, %v598_v46  ;;  %vm645_vm11 = vcmp.eq.f32.partialorder %v644_v9, 8.507059e+37 }
  0xef   :  { %v618_v52 = vmul.f32 %v1033_v43, %v617_v48 }
  0xf0   :  { %v600_v54 = vadd.f32 %v1031_v40, %v599_v49 }
  0xf1   :  { %v1035_v55 = vpop.eup %1034  ;;  %v619_v57 = vadd.f32 %v1033_v43, %v618_v52 }
  0xf2   :  { %v604_v59 = vsel %vm603_vm3, %v1031_v40, %v600_v54  ;;  %v636_v61 = vmul.f32 %v1035_v55, %v634_v42  ;;  %v1037_v62 = vpop.eup %1036  ;;  %vm641_vm8 = vweird.f32 %v1035_v55 }
  0xf3   :  { %v609_v63 = vsel %vm606_vm5, %v608_v56, %v604_v59  ;;  %v623_v0 = vsel %vm622_vm6, %v1033_v43, %v619_v57  ;;  %vm642_vm10 = vmor %vm640_vm9, %vm641_vm8 }
  0xf4   :  { %v628_v1 = vsel %vm625_vm7, %v627_v60, %v623_v0  ;;  %v651_v2 = vmul.f32 %v650_v58, %v609_v63  ;;  %v637_v3 = vsub.f32 1.0, %v636_v61 }
  0xf5   :  { %v652_v4 = vmul.f32 %v1037_v62, %v628_v1 }
  0xf6   :  { %v638_v5 = vmul.f32 %v1035_v55, %v637_v3 }
  0xf7   :  { %v653_v6 = vadd.f32 %v652_v4, %v651_v2 }
  0xf8   :  { %v639_v7 = vadd.f32 %v1035_v55, %v638_v5 }
  0xf9   :  { %657 = vst [vmem:[#allocation11] sm:$0xff] %v653_v6  ;;  %1038 = vtanh.f32 %v653_v6 }
  0xfa   :  { %679 = dma.vmem_to_hbm [thread:$0]  %s675_s22, 128, %s677_s25, [#allocation12]   ;;  %v643_v10 = vsel %vm642_vm10, %v1035_v55, %v639_v7 }
  0xfb   :  { %v648_v13 = vsel %vm645_vm11, %v647_v11, %v643_v10 }
  0xff   :  { %v1039_v12 = vpop.eup %1038 }
 0x100   :  { %v655_v14 = vmul.f32 %v1039_v12, %v648_v13 }
 0x102   :  { %656 = vst [vmem:[#allocation10] sm:$0xff] %v655_v14 }
 0x103   :  { %668 = dma.vmem_to_hbm [thread:$0]  %s664_s27, 128, %s666_s29, [#allocation4]  }
 0x104   :  { %1190 = dma.done.wait [#allocation4], 128  }
 0x105   :  { %1191 = vsyncadd [#allocation4], 4294967168 }
 0x106   :  { %1192 = dma.done.wait [#allocation12], 128  }
 0x107   :  { %1193 = vsyncadd [#allocation12], 4294967168 }
 0x108   :  { %688 = vsyncpa [#allocation3], 1 }
 0x109   :  { %689 = vsyncpa [#allocation6], 1 }
 0x10a   :  { %690 = vsyncpa [#allocation9], 1 }
 0x10b   :  { %691 = vsyncpa [#allocation4], 1 }
 0x10c   :  { %692 = vsyncpa [#allocation12], 1 }

</bundles_post_ra>
